<compile_context>
chip_gen: v6e
topology: v6e:2x2x1
jax: 0.10.0
libtpu: 0.0.40
codegen_flags: <defaults>
</compile_context>

<pallas_src>
import jax
import jax.numpy as jnp
from jax.experimental import pallas as pl
from jax.experimental.pallas import tpu as pltpu

# ---- config (matches the torch module's __init__ shapes) ----
MAX_POS = 128      # config.max_position_embeddings
D_MODEL = 32       # config.d_model


# ----------------------------- kernel -----------------------------

def _position_embeddings_kernel(ids_ref, table_ref, out_ref):
    """out[i, :] = table[ids[i], :] via SMEM-scalar-indexed row copies (no MXU)."""
    n = out_ref.shape[0]          # static: number of lookups (B*S)
    v = table_ref.shape[0]        # static: vocabulary / max positions
    # N is tiny (16); a static Python loop fully unrolls into N dynamic-slice copies.
    for i in range(n):
        idx = ids_ref[i]                                  # scalar int32 from SMEM
        idx = jnp.minimum(jnp.maximum(idx, 0), v - 1)     # clamp: no OOB VMEM read
        out_ref[pl.ds(i, 1), :] = table_ref[pl.ds(idx, 1), :]


# ----------------------------- wrapper -----------------------------

def position_embeddings(position_ids, table):
    """position_ids: (B, S) int32, table: (V, D) f32  ->  (B, S, D) f32."""
    B, S = position_ids.shape
    V, D = table.shape
    N = B * S
    ids_flat = position_ids.reshape(N).astype(jnp.int32)

    out = pl.pallas_call(
        _position_embeddings_kernel,
        out_shape=jax.ShapeDtypeStruct((N, D), table.dtype),
        in_specs=[
            pl.BlockSpec(memory_space=pltpu.MemorySpace.SMEM),   # ids: scalar memory
            pl.BlockSpec(memory_space=pltpu.MemorySpace.VMEM),   # table: 16 KB, one DMA
        ],
        out_specs=pl.BlockSpec(memory_space=pltpu.MemorySpace.VMEM),
    )(ids_flat, table)

    # Dropout (eval mode) is identity.
    return out.reshape(B, S, D)


# ----------------------------- main -----------------------------

if __name__ == "__main__":
    B, S = 2, 8
    key = jax.random.PRNGKey(0)
    k_ids, k_tab = jax.random.split(key)
    position_ids = jax.random.randint(k_ids, (B, S), 0, MAX_POS, dtype=jnp.int32)
    table = (0.02 * jax.random.normal(k_tab, (MAX_POS, D_MODEL))).astype(jnp.float32)

    out = position_embeddings(position_ids, table)
    out = jax.block_until_ready(out)

    # pure-JAX reference: embedding lookup (dropout is identity in eval mode)
    ref = jnp.take(table, position_ids, axis=0)              # (B, S, D)

    assert out.shape == (B, S, D_MODEL), out.shape
    err = float(jnp.max(jnp.abs(out - ref)))
    assert jnp.array_equal(out, ref), f"max abs err {err}"

    print("KERNEL_OK")
</pallas_src>

<mosaic_0001>
module attributes {stable_mosaic.version = 11 : i64} {
  func.func @_position_embeddings_kernel(%arg0: memref<16xi32, #tpu.memory_space<smem>>, %arg1: memref<128x32xf32, #tpu.memory_space<vmem>>, %arg2: memref<16x32xf32, #tpu.memory_space<vmem>>) attributes {dimension_semantics = [], scalar_prefetch = 0 : i64, scratch_operands = 0 : i64, tpu.core_type = #tpu.core_type<tc>} {
    %c0 = arith.constant 0 : index
    %0 = memref.load %arg0[%c0] : memref<16xi32, #tpu.memory_space<smem>>
    %c0_i32 = arith.constant 0 : i32
    %1 = arith.maxsi %0, %c0_i32 : i32
    %c127_i32 = arith.constant 127 : i32
    %2 = arith.minsi %1, %c127_i32 : i32
    %3 = arith.index_cast %2 : i32 to index
    %c0_0 = arith.constant 0 : index
    %4 = vector.load %arg1[%3, %c0_0] : memref<128x32xf32, #tpu.memory_space<vmem>>, vector<1x32xf32>
    %c0_1 = arith.constant 0 : index
    %c0_2 = arith.constant 0 : index
    %5 = vector.load %arg2[%c0_1, %c0_2] : memref<16x32xf32, #tpu.memory_space<vmem>>, vector<1x32xf32>
    tpu.vector_store %arg2[%c0_1, %c0_2], %4 {strides = array<i32>} : memref<16x32xf32, #tpu.memory_space<vmem>>, vector<1x32xf32>,
    %c1 = arith.constant 1 : index
    %6 = memref.load %arg0[%c1] : memref<16xi32, #tpu.memory_space<smem>>
    %c0_i32_3 = arith.constant 0 : i32
    %7 = arith.maxsi %6, %c0_i32_3 : i32
    %c127_i32_4 = arith.constant 127 : i32
    %8 = arith.minsi %7, %c127_i32_4 : i32
    %9 = arith.index_cast %8 : i32 to index
    %c0_5 = arith.constant 0 : index
    %10 = vector.load %arg1[%9, %c0_5] : memref<128x32xf32, #tpu.memory_space<vmem>>, vector<1x32xf32>
    %c1_6 = arith.constant 1 : index
    %c0_7 = arith.constant 0 : index
    %11 = vector.load %arg2[%c1_6, %c0_7] : memref<16x32xf32, #tpu.memory_space<vmem>>, vector<1x32xf32>
    tpu.vector_store %arg2[%c1_6, %c0_7], %10 {strides = array<i32>} : memref<16x32xf32, #tpu.memory_space<vmem>>, vector<1x32xf32>,
    %c2 = arith.constant 2 : index
    %12 = memref.load %arg0[%c2] : memref<16xi32, #tpu.memory_space<smem>>
    %c0_i32_8 = arith.constant 0 : i32
    %13 = arith.maxsi %12, %c0_i32_8 : i32
    %c127_i32_9 = arith.constant 127 : i32
    %14 = arith.minsi %13, %c127_i32_9 : i32
    %15 = arith.index_cast %14 : i32 to index
    %c0_10 = arith.constant 0 : index
    %16 = vector.load %arg1[%15, %c0_10] : memref<128x32xf32, #tpu.memory_space<vmem>>, vector<1x32xf32>
    %c2_11 = arith.constant 2 : index
    %c0_12 = arith.constant 0 : index
    %17 = vector.load %arg2[%c2_11, %c0_12] : memref<16x32xf32, #tpu.memory_space<vmem>>, vector<1x32xf32>
    tpu.vector_store %arg2[%c2_11, %c0_12], %16 {strides = array<i32>} : memref<16x32xf32, #tpu.memory_space<vmem>>, vector<1x32xf32>,
    %c3 = arith.constant 3 : index
    %18 = memref.load %arg0[%c3] : memref<16xi32, #tpu.memory_space<smem>>
    %c0_i32_13 = arith.constant 0 : i32
    %19 = arith.maxsi %18, %c0_i32_13 : i32
    %c127_i32_14 = arith.constant 127 : i32
    %20 = arith.minsi %19, %c127_i32_14 : i32
    %21 = arith.index_cast %20 : i32 to index
    %c0_15 = arith.constant 0 : index
    %22 = vector.load %arg1[%21, %c0_15] : memref<128x32xf32, #tpu.memory_space<vmem>>, vector<1x32xf32>
    %c3_16 = arith.constant 3 : index
    %c0_17 = arith.constant 0 : index
    %23 = vector.load %arg2[%c3_16, %c0_17] : memref<16x32xf32, #tpu.memory_space<vmem>>, vector<1x32xf32>
    tpu.vector_store %arg2[%c3_16, %c0_17], %22 {strides = array<i32>} : memref<16x32xf32, #tpu.memory_space<vmem>>, vector<1x32xf32>,
    %c4 = arith.constant 4 : index
    %24 = memref.load %arg0[%c4] : memref<16xi32, #tpu.memory_space<smem>>
    %c0_i32_18 = arith.constant 0 : i32
    %25 = arith.maxsi %24, %c0_i32_18 : i32
    %c127_i32_19 = arith.constant 127 : i32
    %26 = arith.minsi %25, %c127_i32_19 : i32
    %27 = arith.index_cast %26 : i32 to index
    %c0_20 = arith.constant 0 : index
    %28 = vector.load %arg1[%27, %c0_20] : memref<128x32xf32, #tpu.memory_space<vmem>>, vector<1x32xf32>
    %c4_21 = arith.constant 4 : index
    %c0_22 = arith.constant 0 : index
    %29 = vector.load %arg2[%c4_21, %c0_22] : memref<16x32xf32, #tpu.memory_space<vmem>>, vector<1x32xf32>
    tpu.vector_store %arg2[%c4_21, %c0_22], %28 {strides = array<i32>} : memref<16x32xf32, #tpu.memory_space<vmem>>, vector<1x32xf32>,
    %c5 = arith.constant 5 : index
    %30 = memref.load %arg0[%c5] : memref<16xi32, #tpu.memory_space<smem>>
    %c0_i32_23 = arith.constant 0 : i32
    %31 = arith.maxsi %30, %c0_i32_23 : i32
    %c127_i32_24 = arith.constant 127 : i32
    %32 = arith.minsi %31, %c127_i32_24 : i32
    %33 = arith.index_cast %32 : i32 to index
    %c0_25 = arith.constant 0 : index
    %34 = vector.load %arg1[%33, %c0_25] : memref<128x32xf32, #tpu.memory_space<vmem>>, vector<1x32xf32>
    %c5_26 = arith.constant 5 : index
    %c0_27 = arith.constant 0 : index
    %35 = vector.load %arg2[%c5_26, %c0_27] : memref<16x32xf32, #tpu.memory_space<vmem>>, vector<1x32xf32>
    tpu.vector_store %arg2[%c5_26, %c0_27], %34 {strides = array<i32>} : memref<16x32xf32, #tpu.memory_space<vmem>>, vector<1x32xf32>,
    %c6 = arith.constant 6 : index
    %36 = memref.load %arg0[%c6] : memref<16xi32, #tpu.memory_space<smem>>
    %c0_i32_28 = arith.constant 0 : i32
    %37 = arith.maxsi %36, %c0_i32_28 : i32
    %c127_i32_29 = arith.constant 127 : i32
    %38 = arith.minsi %37, %c127_i32_29 : i32
    %39 = arith.index_cast %38 : i32 to index
    %c0_30 = arith.constant 0 : index
    %40 = vector.load %arg1[%39, %c0_30] : memref<128x32xf32, #tpu.memory_space<vmem>>, vector<1x32xf32>
    %c6_31 = arith.constant 6 : index
    %c0_32 = arith.constant 0 : index
    %41 = vector.load %arg2[%c6_31, %c0_32] : memref<16x32xf32, #tpu.memory_space<vmem>>, vector<1x32xf32>
    tpu.vector_store %arg2[%c6_31, %c0_32], %40 {strides = array<i32>} : memref<16x32xf32, #tpu.memory_space<vmem>>, vector<1x32xf32>,
    %c7 = arith.constant 7 : index
    %42 = memref.load %arg0[%c7] : memref<16xi32, #tpu.memory_space<smem>>
    %c0_i32_33 = arith.constant 0 : i32
    %43 = arith.maxsi %42, %c0_i32_33 : i32
    %c127_i32_34 = arith.constant 127 : i32
    %44 = arith.minsi %43, %c127_i32_34 : i32
    %45 = arith.index_cast %44 : i32 to index
    %c0_35 = arith.constant 0 : index
    %46 = vector.load %arg1[%45, %c0_35] : memref<128x32xf32, #tpu.memory_space<vmem>>, vector<1x32xf32>
    %c7_36 = arith.constant 7 : index
    %c0_37 = arith.constant 0 : index
    %47 = vector.load %arg2[%c7_36, %c0_37] : memref<16x32xf32, #tpu.memory_space<vmem>>, vector<1x32xf32>
    tpu.vector_store %arg2[%c7_36, %c0_37], %46 {strides = array<i32>} : memref<16x32xf32, #tpu.memory_space<vmem>>, vector<1x32xf32>,
    %c8 = arith.constant 8 : index
    %48 = memref.load %arg0[%c8] : memref<16xi32, #tpu.memory_space<smem>>
    %c0_i32_38 = arith.constant 0 : i32
    %49 = arith.maxsi %48, %c0_i32_38 : i32
    %c127_i32_39 = arith.constant 127 : i32
    %50 = arith.minsi %49, %c127_i32_39 : i32
    %51 = arith.index_cast %50 : i32 to index
    %c0_40 = arith.constant 0 : index
    %52 = vector.load %arg1[%51, %c0_40] : memref<128x32xf32, #tpu.memory_space<vmem>>, vector<1x32xf32>
    %c8_41 = arith.constant 8 : index
    %c0_42 = arith.constant 0 : index
    %53 = vector.load %arg2[%c8_41, %c0_42] : memref<16x32xf32, #tpu.memory_space<vmem>>, vector<1x32xf32>
    tpu.vector_store %arg2[%c8_41, %c0_42], %52 {strides = array<i32>} : memref<16x32xf32, #tpu.memory_space<vmem>>, vector<1x32xf32>,
    %c9 = arith.constant 9 : index
    %54 = memref.load %arg0[%c9] : memref<16xi32, #tpu.memory_space<smem>>
    %c0_i32_43 = arith.constant 0 : i32
    %55 = arith.maxsi %54, %c0_i32_43 : i32
    %c127_i32_44 = arith.constant 127 : i32
    %56 = arith.minsi %55, %c127_i32_44 : i32
    %57 = arith.index_cast %56 : i32 to index
    %c0_45 = arith.constant 0 : index
    %58 = vector.load %arg1[%57, %c0_45] : memref<128x32xf32, #tpu.memory_space<vmem>>, vector<1x32xf32>
    %c9_46 = arith.constant 9 : index
    %c0_47 = arith.constant 0 : index
    %59 = vector.load %arg2[%c9_46, %c0_47] : memref<16x32xf32, #tpu.memory_space<vmem>>, vector<1x32xf32>
    tpu.vector_store %arg2[%c9_46, %c0_47], %58 {strides = array<i32>} : memref<16x32xf32, #tpu.memory_space<vmem>>, vector<1x32xf32>,
    %c10 = arith.constant 10 : index
    %60 = memref.load %arg0[%c10] : memref<16xi32, #tpu.memory_space<smem>>
    %c0_i32_48 = arith.constant 0 : i32
    %61 = arith.maxsi %60, %c0_i32_48 : i32
    %c127_i32_49 = arith.constant 127 : i32
    %62 = arith.minsi %61, %c127_i32_49 : i32
    %63 = arith.index_cast %62 : i32 to index
    %c0_50 = arith.constant 0 : index
    %64 = vector.load %arg1[%63, %c0_50] : memref<128x32xf32, #tpu.memory_space<vmem>>, vector<1x32xf32>
    %c10_51 = arith.constant 10 : index
    %c0_52 = arith.constant 0 : index
    %65 = vector.load %arg2[%c10_51, %c0_52] : memref<16x32xf32, #tpu.memory_space<vmem>>, vector<1x32xf32>
    tpu.vector_store %arg2[%c10_51, %c0_52], %64 {strides = array<i32>} : memref<16x32xf32, #tpu.memory_space<vmem>>, vector<1x32xf32>,
    %c11 = arith.constant 11 : index
    %66 = memref.load %arg0[%c11] : memref<16xi32, #tpu.memory_space<smem>>
    %c0_i32_53 = arith.constant 0 : i32
    %67 = arith.maxsi %66, %c0_i32_53 : i32
    %c127_i32_54 = arith.constant 127 : i32
    %68 = arith.minsi %67, %c127_i32_54 : i32
    %69 = arith.index_cast %68 : i32 to index
    %c0_55 = arith.constant 0 : index
    %70 = vector.load %arg1[%69, %c0_55] : memref<128x32xf32, #tpu.memory_space<vmem>>, vector<1x32xf32>
    %c11_56 = arith.constant 11 : index
    %c0_57 = arith.constant 0 : index
    %71 = vector.load %arg2[%c11_56, %c0_57] : memref<16x32xf32, #tpu.memory_space<vmem>>, vector<1x32xf32>
    tpu.vector_store %arg2[%c11_56, %c0_57], %70 {strides = array<i32>} : memref<16x32xf32, #tpu.memory_space<vmem>>, vector<1x32xf32>,
    %c12 = arith.constant 12 : index
    %72 = memref.load %arg0[%c12] : memref<16xi32, #tpu.memory_space<smem>>
    %c0_i32_58 = arith.constant 0 : i32
    %73 = arith.maxsi %72, %c0_i32_58 : i32
    %c127_i32_59 = arith.constant 127 : i32
    %74 = arith.minsi %73, %c127_i32_59 : i32
    %75 = arith.index_cast %74 : i32 to index
    %c0_60 = arith.constant 0 : index
    %76 = vector.load %arg1[%75, %c0_60] : memref<128x32xf32, #tpu.memory_space<vmem>>, vector<1x32xf32>
    %c12_61 = arith.constant 12 : index
    %c0_62 = arith.constant 0 : index
    %77 = vector.load %arg2[%c12_61, %c0_62] : memref<16x32xf32, #tpu.memory_space<vmem>>, vector<1x32xf32>
    tpu.vector_store %arg2[%c12_61, %c0_62], %76 {strides = array<i32>} : memref<16x32xf32, #tpu.memory_space<vmem>>, vector<1x32xf32>,
    %c13 = arith.constant 13 : index
    %78 = memref.load %arg0[%c13] : memref<16xi32, #tpu.memory_space<smem>>
    %c0_i32_63 = arith.constant 0 : i32
    %79 = arith.maxsi %78, %c0_i32_63 : i32
    %c127_i32_64 = arith.constant 127 : i32
    %80 = arith.minsi %79, %c127_i32_64 : i32
    %81 = arith.index_cast %80 : i32 to index
    %c0_65 = arith.constant 0 : index
    %82 = vector.load %arg1[%81, %c0_65] : memref<128x32xf32, #tpu.memory_space<vmem>>, vector<1x32xf32>
    %c13_66 = arith.constant 13 : index
    %c0_67 = arith.constant 0 : index
    %83 = vector.load %arg2[%c13_66, %c0_67] : memref<16x32xf32, #tpu.memory_space<vmem>>, vector<1x32xf32>
    tpu.vector_store %arg2[%c13_66, %c0_67], %82 {strides = array<i32>} : memref<16x32xf32, #tpu.memory_space<vmem>>, vector<1x32xf32>,
    %c14 = arith.constant 14 : index
    %84 = memref.load %arg0[%c14] : memref<16xi32, #tpu.memory_space<smem>>
    %c0_i32_68 = arith.constant 0 : i32
    %85 = arith.maxsi %84, %c0_i32_68 : i32
    %c127_i32_69 = arith.constant 127 : i32
    %86 = arith.minsi %85, %c127_i32_69 : i32
    %87 = arith.index_cast %86 : i32 to index
    %c0_70 = arith.constant 0 : index
    %88 = vector.load %arg1[%87, %c0_70] : memref<128x32xf32, #tpu.memory_space<vmem>>, vector<1x32xf32>
    %c14_71 = arith.constant 14 : index
    %c0_72 = arith.constant 0 : index
    %89 = vector.load %arg2[%c14_71, %c0_72] : memref<16x32xf32, #tpu.memory_space<vmem>>, vector<1x32xf32>
    tpu.vector_store %arg2[%c14_71, %c0_72], %88 {strides = array<i32>} : memref<16x32xf32, #tpu.memory_space<vmem>>, vector<1x32xf32>,
    %c15 = arith.constant 15 : index
    %90 = memref.load %arg0[%c15] : memref<16xi32, #tpu.memory_space<smem>>
    %c0_i32_73 = arith.constant 0 : i32
    %91 = arith.maxsi %90, %c0_i32_73 : i32
    %c127_i32_74 = arith.constant 127 : i32
    %92 = arith.minsi %91, %c127_i32_74 : i32
    %93 = arith.index_cast %92 : i32 to index
    %c0_75 = arith.constant 0 : index
    %94 = vector.load %arg1[%93, %c0_75] : memref<128x32xf32, #tpu.memory_space<vmem>>, vector<1x32xf32>
    %c15_76 = arith.constant 15 : index
    %c0_77 = arith.constant 0 : index
    %95 = vector.load %arg2[%c15_76, %c0_77] : memref<16x32xf32, #tpu.memory_space<vmem>>, vector<1x32xf32>
    tpu.vector_store %arg2[%c15_76, %c0_77], %94 {strides = array<i32>} : memref<16x32xf32, #tpu.memory_space<vmem>>, vector<1x32xf32>,
    return
  }
}

</mosaic_0001>

<bundles_post_ra>
// kernel: tpu_custom_call.1
= control target key start
LH: loop header
LB: loop body
LE: loop exit
PB: predicated region body
PF: predicated region fallthrough
CT: control target
= control target key end

     0   :  { %7 = vsyncpa [#allocation4], 0  ;;  %s463_s0 = inlined_call_operand.vmem [shape: s32[16], index: 0, kind: input, shape index: {}]   ;;  %s464_s1 = inlined_call_operand.vmem [shape: f32[128,32], index: 1, kind: input, shape index: {}]   ;;  %s465_s2 = inlined_call_operand.hbm [shape: f32[16,32], index: 2, kind: output, shape index: {}]  }
   0x1   :  { %8 = vsyncpa [#allocation3], 0  ;;  %s15_s11 = sshll.u32 %s463_s0, 4  ;;  %s16_s11 = int_to_ptr.vmem [resolvable:$true] %s15_s11 }
   0x2   :  { %s318_s12 = scalar_lea.vmem %s16_s11, 16  ;;  %p323_p1 = scmp.lt.s32.totalorder %s16_s11, %s16_s11 }
   0x3   :  { %p319_p0 = scmp.ne.s32.totalorder %s16_s11, %s318_s12  ;;  %p324_p2 = scmp.lt.s32.totalorder %s318_s12, %s318_s12 }
   0x5   :  { %p325_p3 = por %p324_p2, %p323_p1 }
   0x7   :  { %p326_p4 = pnand %p325_p3, %p319_p0 }
   0x9   :  { %329 = shalt.err (!%p326_p4)
}
   0xa   :  { %s354_s13 = smov [#allocation2]  }
   0xb   :  { %18 = dma.vmem_to_smem %s16_s11, 16, %s354_s13, [#allocation4]  }
   0xc   :  { %350 = dma.done.wait [#allocation4], 16  }
   0xd   :  { %351 = vsyncadd [#allocation4], 4294967280 }
   0xe   :  { %24 = sfence }
   0xf   :  { %s25_s14 = sld [smem:[#allocation2]]  ;;  %vm32_vm0 = vcmask 253952  }
  0x10   :  { %s192_s15 = sld [smem:[#allocation2 + $0x1]] }
  0x11   :  { %s198_s16 = sld [smem:[#allocation2 + $0x2]] }
  0x12   :  { %s204_s17 = sld [smem:[#allocation2 + $0x3]] }
  0x13   :  { %s376_s18 = sld [smem:[#allocation2 + $0x4]] }
  0x14   :  { %s378_s0 = sld [smem:[#allocation2 + $0x5]] }
  0x15   :  { %p26_p5 = scmp.gt.s32.totalorder %s25_s14, 0  ;;  %p187_p6 = scmp.lt.s32.totalorder %s25_s14, 127 }
  0x16   :  { %p35_p7 = scmp.gt.s32.totalorder %s192_s15, 0  ;;  %p193_p8 = scmp.lt.s32.totalorder %s192_s15, 127 }
  0x17   :  { %s467_s14 = smov (!%p26_p5, %s25_s14), 0  ;;  %p43_p9 = scmp.gt.s32.totalorder %s198_s16, 0 }
  0x18   :  { %s469_s15 = smov (!%p35_p7, %s192_s15), 0  ;;  %s471_s14 = smov (!%p187_p6, %s467_s14), 127 }
  0x19   :  { %s473_s15 = smov (!%p193_p8, %s469_s15), 127  ;;  %s30_s21 = scalar_lea.vmem %s464_s1, %s471_s14 }
  0x1a   :  { %v31_v0 = vld [vmem:[%s30_s21] sm:$0x1]  ;;  %s39_s24 = scalar_lea.vmem %s464_s1, %s473_s15  ;;  %p199_p10 = scmp.lt.s32.totalorder %s198_s16, 127 }
  0x1b   :  { %33 = vst.msk [vmem:[#allocation5] sm:$0x1] %vm32_vm0, %v31_v0  ;;  %v40_v1 = vld [vmem:[%s39_s24] sm:$0x1]  ;;  %s475_s16 = smov (!%p43_p9, %s198_s16), 0  ;;  %p51_p11 = scmp.gt.s32.totalorder %s204_s17, 0 }
  0x1c   :  { %41 = vst.msk [vmem:[#allocation5 + $0x1] sm:$0x1] %vm32_vm0, %v40_v1  ;;  %p205_p12 = scmp.lt.s32.totalorder %s204_s17, 127  ;;  %s477_s16 = smov (!%p199_p10, %s475_s16), 127 }
  0x1d   :  { %s479_s17 = smov (!%p51_p11, %s204_s17), 0  ;;  %s47_s27 = scalar_lea.vmem %s464_s1, %s477_s16 }
  0x1e   :  { %p59_p13 = scmp.gt.s32.totalorder %s376_s18, 0  ;;  %v48_v2 = vld [vmem:[%s47_s27] sm:$0x1]  ;;  %s481_s17 = smov (!%p205_p12, %s479_s17), 127 }
  0x1f   :  { %49 = vst.msk [vmem:[#allocation5 + $0x2] sm:$0x1] %vm32_vm0, %v48_v2  ;;  %s55_s3 = scalar_lea.vmem %s464_s1, %s481_s17  ;;  %p211_p0 = scmp.lt.s32.totalorder %s376_s18, 127 }
  0x20   :  { %s60_s28 = scalar_select %p59_p13, %s376_s18, 0  ;;  %v56_v3 = vld [vmem:[%s55_s3] sm:$0x1] }
  0x21   :  { %p67_p1 = scmp.gt.s32.totalorder %s378_s0, 0  ;;  %p217_p2 = scmp.lt.s32.totalorder %s378_s0, 127  ;;  %57 = vst.msk [vmem:[#allocation5 + $0x3] sm:$0x1] %vm32_vm0, %v56_v3 }
  0x22   :  { %s483_s28 = smov (!%p211_p0, %s60_s28), 127  ;;  %s222_s7 = sld [smem:[#allocation2 + $0x6]] }
  0x23   :  { %s485_s0 = smov (!%p67_p1, %s378_s0), 0  ;;  %s63_s6 = scalar_lea.vmem %s464_s1, %s483_s28 }
  0x24   :  { %v64_v4 = vld [vmem:[%s63_s6] sm:$0x1]  ;;  %s487_s0 = smov (!%p217_p2, %s485_s0), 127  ;;  %s228_s8 = sld [smem:[#allocation2 + $0x7]] }
  0x25   :  { %65 = vst.msk [vmem:[#allocation5 + $0x4] sm:$0x1] %vm32_vm0, %v64_v4  ;;  %s71_s11 = scalar_lea.vmem %s464_s1, %s487_s0  ;;  %s234_s12 = sld [smem:[#allocation2 + $0x8]] }
  0x26   :  { %v72_v5 = vld [vmem:[%s71_s11] sm:$0x1]  ;;  %s240_s13 = sld [smem:[#allocation2 + $0x9]]  ;;  %s355_s11 = smov [#allocation5]  }
  0x27   :  { %73 = vst.msk [vmem:[#allocation5 + $0x5] sm:$0x1] %vm32_vm0, %v72_v5  ;;  %s410_s14 = sld [smem:[#allocation2 + $0xa]] }
  0x28   :  { %p75_p3 = scmp.gt.s32.totalorder %s222_s7, 0  ;;  %p223_p4 = scmp.lt.s32.totalorder %s222_s7, 127 }
  0x29   :  { %s412_s15 = sld [smem:[#allocation2 + $0xb]] }
  0x2a   :  { %s489_s7 = smov (!%p75_p3, %s222_s7), 0  ;;  %p83_p5 = scmp.gt.s32.totalorder %s228_s8, 0 }
  0x2b   :  { %p229_p6 = scmp.lt.s32.totalorder %s228_s8, 127  ;;  %s491_s7 = smov (!%p223_p4, %s489_s7), 127 }
  0x2c   :  { %s493_s8 = smov (!%p83_p5, %s228_s8), 0  ;;  %s79_s18 = scalar_lea.vmem %s464_s1, %s491_s7 }
  0x2d   :  { %p91_p7 = scmp.gt.s32.totalorder %s234_s12, 0  ;;  %v80_v6 = vld [vmem:[%s79_s18] sm:$0x1]  ;;  %s495_s8 = smov (!%p229_p6, %s493_s8), 127 }
  0x2e   :  { %81 = vst.msk [vmem:[#allocation5 + $0x6] sm:$0x1] %vm32_vm0, %v80_v6  ;;  %s87_s21 = scalar_lea.vmem %s464_s1, %s495_s8  ;;  %p235_p8 = scmp.lt.s32.totalorder %s234_s12, 127 }
  0x2f   :  { %s92_s0 = scalar_select %p91_p7, %s234_s12, 0  ;;  %v88_v7 = vld [vmem:[%s87_s21] sm:$0x1] }
  0x30   :  { %p99_p9 = scmp.gt.s32.totalorder %s240_s13, 0  ;;  %p241_p10 = scmp.lt.s32.totalorder %s240_s13, 127  ;;  %89 = vst.msk [vmem:[#allocation5 + $0x7] sm:$0x1] %vm32_vm0, %v88_v7 }
  0x31   :  { %s497_s0 = smov (!%p235_p8, %s92_s0), 127  ;;  %p107_p11 = scmp.gt.s32.totalorder %s410_s14, 0 }
  0x32   :  { %s499_s13 = smov (!%p99_p9, %s240_s13), 0  ;;  %s95_s24 = scalar_lea.vmem %s464_s1, %s497_s0 }
  0x33   :  { %v96_v8 = vld [vmem:[%s95_s24] sm:$0x1]  ;;  %s501_s13 = smov (!%p241_p10, %s499_s13), 127  ;;  %p247_p12 = scmp.lt.s32.totalorder %s410_s14, 127 }
  0x34   :  { %97 = vst.msk [vmem:[#allocation5 + $0x8] sm:$0x1] %vm32_vm0, %v96_v8  ;;  %s108_s25 = scalar_select %p107_p11, %s410_s14, 0 }
  0x35   :  { %s103_s28 = scalar_lea.vmem %s464_s1, %s501_s13  ;;  %p115_p13 = scmp.gt.s32.totalorder %s412_s15, 0 }
  0x36   :  { %v104_v9 = vld [vmem:[%s103_s28] sm:$0x1]  ;;  %p253_p0 = scmp.lt.s32.totalorder %s412_s15, 127  ;;  %s503_s25 = smov (!%p247_p12, %s108_s25), 127 }
  0x37   :  { %105 = vst.msk [vmem:[#allocation5 + $0x9] sm:$0x1] %vm32_vm0, %v104_v9  ;;  %s505_s15 = smov (!%p115_p13, %s412_s15), 0  ;;  %s111_s3 = scalar_lea.vmem %s464_s1, %s503_s25 }
  0x38   :  { %s258_s4 = sld [smem:[#allocation2 + $0xc]]  ;;  %v112_v10 = vld [vmem:[%s111_s3] sm:$0x1]  ;;  %s507_s15 = smov (!%p253_p0, %s505_s15), 127 }
  0x39   :  { %113 = vst.msk [vmem:[#allocation5 + $0xa] sm:$0x1] %vm32_vm0, %v112_v10  ;;  %s264_s5 = sld [smem:[#allocation2 + $0xd]]  ;;  %s119_s8 = scalar_lea.vmem %s464_s1, %s507_s15 }
  0x3a   :  { %v120_v11 = vld [vmem:[%s119_s8] sm:$0x1]  ;;  %s270_s9 = sld [smem:[#allocation2 + $0xe]]  ;;  %s159_s12 = sshll.u32 %s355_s11, 4  ;;  %s160_s12 = int_to_ptr.vmem [resolvable:$true] %s159_s12 }
  0x3b   :  { %121 = vst.msk [vmem:[#allocation5 + $0xb] sm:$0x1] %vm32_vm0, %v120_v11  ;;  %s276_s10 = sld [smem:[#allocation2 + $0xf]]  ;;  %s330_s25 = scalar_lea.vmem %s160_s12, 256 }
  0x3c   :  { %p331_p9 = scmp.ne.s32.totalorder %s160_s12, %s330_s25  ;;  %p335_p10 = scmp.lt.s32.totalorder %s160_s12, %s160_s12 }
  0x3d   :  { %p336_p11 = scmp.lt.s32.totalorder %s330_s25, %s330_s25 }
  0x3e   :  { %p123_p1 = scmp.gt.s32.totalorder %s258_s4, 0  ;;  %p259_p2 = scmp.lt.s32.totalorder %s258_s4, 127 }
  0x3f   :  { %p131_p3 = scmp.gt.s32.totalorder %s264_s5, 0  ;;  %p265_p4 = scmp.lt.s32.totalorder %s264_s5, 127 }
  0x40   :  { %s509_s4 = smov (!%p123_p1, %s258_s4), 0  ;;  %p139_p5 = scmp.gt.s32.totalorder %s270_s9, 0 }
  0x41   :  { %s511_s4 = smov (!%p259_p2, %s509_s4), 127  ;;  %s513_s5 = smov (!%p131_p3, %s264_s5), 0 }
  0x42   :  { %s127_s16 = scalar_lea.vmem %s464_s1, %s511_s4  ;;  %s515_s5 = smov (!%p265_p4, %s513_s5), 127 }
  0x43   :  { %v128_v12 = vld [vmem:[%s127_s16] sm:$0x1]  ;;  %s140_s15 = scalar_select %p139_p5, %s270_s9, 0 }
  0x44   :  { %129 = vst.msk [vmem:[#allocation5 + $0xc] sm:$0x1] %vm32_vm0, %v128_v12  ;;  %s135_s0 = scalar_lea.vmem %s464_s1, %s515_s5  ;;  %p271_p6 = scmp.lt.s32.totalorder %s270_s9, 127 }
  0x45   :  { %v136_v13 = vld [vmem:[%s135_s0] sm:$0x1]  ;;  %p147_p7 = scmp.gt.s32.totalorder %s276_s10, 0  ;;  %p277_p8 = scmp.lt.s32.totalorder %s276_s10, 127 }
  0x46   :  { %137 = vst.msk [vmem:[#allocation5 + $0xd] sm:$0x1] %vm32_vm0, %v136_v13  ;;  %s517_s15 = smov (!%p271_p6, %s140_s15), 127  ;;  %p337_p12 = por %p336_p11, %p335_p10 }
  0x47   :  { %s519_s10 = smov (!%p147_p7, %s276_s10), 0  ;;  %s143_s21 = scalar_lea.vmem %s464_s1, %s517_s15 }
  0x48   :  { %v144_v14 = vld [vmem:[%s143_s21] sm:$0x1]  ;;  %s521_s10 = smov (!%p277_p8, %s519_s10), 127  ;;  %p338_p13 = pnand %p337_p12, %p331_p9 }
  0x49   :  { %145 = vst.msk [vmem:[#allocation5 + $0xe] sm:$0x1] %vm32_vm0, %v144_v14  ;;  %s151_s24 = scalar_lea.vmem %s464_s1, %s521_s10 }
  0x4a   :  { %v152_v15 = vld [vmem:[%s151_s24] sm:$0x1] }
  0x4b   :  { %153 = vst.msk [vmem:[#allocation5 + $0xf] sm:$0x1] %vm32_vm0, %v152_v15 }
  0x4c   :  { %341 = shalt.err (!%p338_p13)
}
  0x4d   :  { %s356_s26 = smov 128   ;;  %s357_s27 = smov 8  }
  0x4e   :  { %165 = dma.vmem_to_hbm [thread:$0]  %s160_s12, 256, %s465_s2, [#allocation3], %s356_s26, %s356_s26, %s357_s27  }
  0x4f   :  { %352 = dma.done.wait [#allocation3], 256  }
  0x50   :  { %353 = vsyncadd [#allocation3], 4294967040 }
  0x51   :  { %169 = vsyncpa [#allocation3], 1 }
  0x52   :  { %170 = vsyncpa [#allocation4], 1 }

</bundles_post_ra>
